<compile_context>
chip_gen: v5e
topology: v5e:2x2
jax: 0.10.0
libtpu: 0.0.40
codegen_flags: <defaults>
</compile_context>

<pallas_src>
from functools import partial

import jax
import jax.numpy as jnp
from jax.experimental import pallas as pl
from jax.experimental.pallas import tpu as pltpu

EPS = 1e-8


def _round_up(x, m):
    return (x + m - 1) // m * m


def rpe_kernel(pos_ref, w_ref, head_ref, b_ref, o_ref):
    """One row-tile of the Rpe MLP in transposed (feature, N) lane-dense layout.

    pos_ref:  (1, TN)        relative positions, lane-dense
    w_ref:    (D, 3*D)       [W1^T | W2^T | W3^T] hidden-layer weights
    head_ref: (OUT, D + 1)   [Wo^T | bo] output head
    b_ref:    (D, 5)         columns = [w0, b0, b1, b2, b3]
    o_ref:    (OUT, TN)      transposed output tile
    """
    d = w_ref.shape[0]
    inv_sqrt_d = float(d) ** -0.5

    b = b_ref[...]                          # (D, 5)
    pos = pos_ref[...]                      # (1, TN)

    # pos_proj: Linear(1 -> D) == outer-product broadcast; fully lane-dense VPU.
    x = b[:, 0:1] * pos + b[:, 1:2]         # (D, TN)

    def norm_scale(x):
        # SimpleRMSNorm scale: 1 / (||x||/sqrt(d) + eps).  Sublane (XLU) reduce
        # + EUP sqrt/recip; runs in parallel with the MXU work below because
        # the matmul input no longer depends on it.
        ss = jnp.sum(x * x, axis=0, keepdims=True)                  # (1, TN)
        return pl.reciprocal(jnp.sqrt(ss) * inv_sqrt_d + EPS, approx=False)

    # residual=True, layers=3 (unrolled).  Deferred scaling:
    #   relu(x * inv) @ W == (relu(x) @ W) * inv   because inv > 0 (per-column).
    for i in range(3):
        inv = norm_scale(x)
        a = jnp.maximum(x, 0.0)
        w = w_ref[:, i * d:(i + 1) * d]                             # (D, D)
        z = jnp.dot(w, a, preferred_element_type=jnp.float32)       # (D, TN)
        x = z * inv + b[:, 2 + i:3 + i] + x

    # Output head: (OUT, D) x (D, TN) -> direct unmasked lane-dense store.
    inv = norm_scale(x)
    a = jnp.maximum(x, 0.0)
    wo = head_ref[:, :d]                                            # (OUT, D)
    bo = head_ref[:, d:d + 1]                                       # (OUT, 1)
    z = jnp.dot(wo, a, preferred_element_type=jnp.float32)          # (OUT, TN)
    o_ref[...] = (z * inv + bo).astype(o_ref.dtype)


def pack_params(params):
    """Pack the 10 weight/bias tensors into 3 kernel operands (transposed layout)."""
    # Hidden-layer weights, lane-dense slab (D, 3*D).
    w_pack = jnp.concatenate(
        [params["w1"].T, params["w2"].T, params["w3"].T], axis=1
    ).astype(jnp.float32)
    # Output head (no zero-padding to D rows): [Wo^T | bo] -> (OUT, D+1).
    head = jnp.concatenate(
        [params["wo"].T, params["bo"].T], axis=1
    ).astype(jnp.float32)
    # pos_proj weight/bias + hidden biases -> (D, 5).
    b_pack = jnp.stack(
        [params["w0"][0], params["b0"][0],
         params["bb1"][0], params["bb2"][0], params["bb3"][0]],
        axis=1,
    ).astype(jnp.float32)
    return {"w_pack": w_pack, "head": head, "b_pack": b_pack}


@partial(jax.jit, static_argnames=("max_tile_n",))
def rpe_forward(biases, packed, *, max_tile_n=8192):
    """biases: (N, 1) f32.  packed: output of pack_params().  Returns (N, outdim)."""
    n = biases.shape[0]
    w_pack = packed["w_pack"]
    head = packed["head"]
    b_pack = packed["b_pack"]
    d = w_pack.shape[0]
    outdim = head.shape[0]          # NOTE: outdim that is a multiple of 8 (16 here)
                                    # gives unmasked stores; others still work.

    # ---- tile selection -----------------------------------------------------
    # Lane-dense layout: positions on the 128-lane axis.  Pick the biggest tile
    # that (a) fits max_tile_n and (b) splits the work into >=2 (even, balanced)
    # grid steps whenever N > 128, so the "parallel" grid axis shards across
    # both v7x TensorCores.  VMEM use at TN=8192 is only a few MB.
    n128 = _round_up(n, 128)
    max_tile = max(128, _round_up(max_tile_n, 128))
    num_tiles = max(1, pl.cdiv(n128, max_tile))
    if n128 > 128:
        num_tiles = max(num_tiles, 2)
        num_tiles += num_tiles % 2          # even count -> balanced megacore split
    tile_n = _round_up(pl.cdiv(n128, num_tiles), 128)
    n_pad = _round_up(n128, tile_n)
    grid = (n_pad // tile_n,)

    # ---- input layout (fused under this jit) --------------------------------
    pos = biases.reshape(1, n)
    if n_pad != n:
        pos = jnp.pad(pos, ((0, 0), (0, n_pad - n)))     # padded tail is discarded

    out_t = pl.pallas_call(
        rpe_kernel,
        out_shape=jax.ShapeDtypeStruct((outdim, n_pad), jnp.float32),
        grid=grid,
        in_specs=[
            pl.BlockSpec((1, tile_n), lambda i: (0, i)),        # positions: tiled over N
            pl.BlockSpec(w_pack.shape, lambda i: (0, 0)),       # weights: pinned in VMEM
            pl.BlockSpec(head.shape, lambda i: (0, 0)),         # output head: pinned
            pl.BlockSpec(b_pack.shape, lambda i: (0, 0)),       # biases: pinned
        ],
        out_specs=pl.BlockSpec((outdim, tile_n), lambda i: (0, i)),
        compiler_params=pltpu.CompilerParams(
            dimension_semantics=("parallel",),                  # megacore split on v7x
        ),
    )(pos, w_pack, head, b_pack)

    # Back to the PyTorch (N, outdim) convention; padded columns discarded.
    # (Fused with surrounding ops under this jit.)
    return out_t[:, :n].T


# ------------------------- reference / test harness -------------------------

def _simple_rms_norm(x):
    dnum = x.shape[-1]
    norm = jnp.sqrt(jnp.sum(x * x, axis=-1, keepdims=True))
    rms = norm * (float(dnum) ** -0.5)
    return x / (rms + EPS)


def init_params(key, pos_dim, outdim):
    """Deterministic synthetic init (shapes match the nn.Module __init__),
    weights stored transposed as (in_features, out_features)."""
    ks = jax.random.split(key, 10)

    def lin(kw, kb, fan_in, fan_out):
        w = jax.random.normal(kw, (fan_in, fan_out), jnp.float32) * (fan_in ** -0.5)
        b = jax.random.normal(kb, (1, fan_out), jnp.float32) * 0.02
        return w, b

    w0, b0 = lin(ks[0], ks[1], 1, pos_dim)
    w1, bb1 = lin(ks[2], ks[3], pos_dim, pos_dim)
    w2, bb2 = lin(ks[4], ks[5], pos_dim, pos_dim)
    w3, bb3 = lin(ks[6], ks[7], pos_dim, pos_dim)
    wo, bo = lin(ks[8], ks[9], pos_dim, outdim)
    return dict(w0=w0, b0=b0, w1=w1, bb1=bb1, w2=w2, bb2=bb2,
                w3=w3, bb3=bb3, wo=wo, bo=bo)


def rpe_reference(biases, params):
    """Pure-JAX reference mirroring the PyTorch forward (residual=True)."""
    x = biases * params["w0"] + params["b0"]

    def block(x, w, b):
        return jnp.maximum(_simple_rms_norm(x), 0.0) @ w + b

    x = block(x, params["w1"], params["bb1"]) + x
    x = block(x, params["w2"], params["bb2"]) + x
    x = block(x, params["w3"], params["bb3"]) + x
    return block(x, params["wo"], params["bo"])


if __name__ == "__main__":
    POS_DIM = 32     # dim
    OUT_DIM = 16     # outdim (e.g. num heads)

    key = jax.random.PRNGKey(0)
    kb1, kb2, kp = jax.random.split(key, 3)
    params = init_params(kp, POS_DIM, OUT_DIM)
    packed = pack_params(params)

    # Small demo case (single grid step).
    b_small = jax.random.normal(kb1, (8, 1), jnp.float32)
    out_small = jax.block_until_ready(rpe_forward(b_small, packed))
    ref_small = rpe_reference(b_small, params)
    assert out_small.shape == (8, OUT_DIM), out_small.shape
    assert jnp.allclose(out_small, ref_small, atol=1e-5, rtol=1e-5), \
        float(jnp.max(jnp.abs(out_small - ref_small)))

    # Larger, non-multiple N exercising the 2-step pipelined grid + padding.
    b_big = jax.random.normal(kb2, (300, 1), jnp.float32)
    out_big = jax.block_until_ready(rpe_forward(b_big, packed))
    ref_big = rpe_reference(b_big, params)
    assert out_big.shape == (300, OUT_DIM), out_big.shape
    assert jnp.allclose(out_big, ref_big, atol=1e-5, rtol=1e-5), \
        float(jnp.max(jnp.abs(out_big - ref_big)))

    print("KERNEL_OK")
</pallas_src>

<mosaic_0001>
module attributes {stable_mosaic.version = 11 : i64} {
  func.func @rpe_kernel(%arg0: i32, %arg1: memref<1x128xf32, #tpu.memory_space<vmem>>, %arg2: memref<32x96xf32, #tpu.memory_space<vmem>>, %arg3: memref<16x33xf32, #tpu.memory_space<vmem>>, %arg4: memref<32x5xf32, #tpu.memory_space<vmem>>, %arg5: memref<16x128xf32, #tpu.memory_space<vmem>>) attributes {dimension_semantics = [#tpu.dimension_semantics<parallel>], iteration_bounds = array<i64: 1>, scalar_prefetch = 0 : i64, scratch_operands = 0 : i64, tpu.core_type = #tpu.core_type<tc>, window_params = [{transform_indices = @transform_0, window_bounds = array<i64: 1, 128>}, {pipeline_mode = #tpu.pipeline_mode<synchronous>, transform_indices = @transform_1, window_bounds = array<i64: 32, 96>}, {pipeline_mode = #tpu.pipeline_mode<synchronous>, transform_indices = @transform_2, window_bounds = array<i64: 16, 33>}, {pipeline_mode = #tpu.pipeline_mode<synchronous>, transform_indices = @transform_3, window_bounds = array<i64: 32, 5>}, {transform_indices = @transform_4, window_bounds = array<i64: 16, 128>}]} {
    %c0 = arith.constant 0 : index
    %c0_0 = arith.constant 0 : index
    %0 = vector.load %arg4[%c0, %c0_0] : memref<32x5xf32, #tpu.memory_space<vmem>>, vector<32x5xf32>
    %c0_1 = arith.constant 0 : index
    %c0_2 = arith.constant 0 : index
    %1 = vector.load %arg1[%c0_1, %c0_2] : memref<1x128xf32, #tpu.memory_space<vmem>>, vector<1x128xf32>
    %2 = vector.extract_strided_slice %0 {offsets = [0, 0], sizes = [32, 1], strides = [1, 1]} : vector<32x5xf32> to vector<32x1xf32>
    %3 = vector.broadcast %2 : vector<32x1xf32> to vector<32x128xf32>
    %4 = vector.broadcast %1 : vector<1x128xf32> to vector<32x128xf32>
    %5 = arith.mulf %3, %4 : vector<32x128xf32>
    %6 = vector.extract_strided_slice %0 {offsets = [0, 1], sizes = [32, 1], strides = [1, 1]} : vector<32x5xf32> to vector<32x1xf32>
    %7 = vector.broadcast %6 : vector<32x1xf32> to vector<32x128xf32>
    %8 = arith.addf %5, %7 : vector<32x128xf32>
    %9 = arith.mulf %8, %8 : vector<32x128xf32>
    %cst = arith.constant dense<0.000000e+00> : vector<128xf32>
    %10 = vector.multi_reduction <add>, %9, %cst [0] : vector<32x128xf32> to vector<128xf32>
    %11 = vector.shape_cast %10 : vector<128xf32> to vector<1x128xf32>
    %12 = math.sqrt %11 : vector<1x128xf32>
    %cst_3 = arith.constant 0.176776692 : f32
    %13 = vector.broadcast %cst_3 : f32 to vector<1x128xf32>
    %14 = arith.mulf %12, %13 : vector<1x128xf32>
    %cst_4 = arith.constant 9.99999993E-9 : f32
    %15 = vector.broadcast %cst_4 : f32 to vector<1x128xf32>
    %16 = arith.addf %14, %15 : vector<1x128xf32>
    %17 = tpu.reciprocal %16 : vector<1x128xf32> -> vector<1x128xf32>
    %cst_5 = arith.constant 0.000000e+00 : f32
    %18 = vector.broadcast %cst_5 : f32 to vector<32x128xf32>
    %19 = arith.maximumf %8, %18 : vector<32x128xf32>
    %c0_6 = arith.constant 0 : index
    %c0_7 = arith.constant 0 : index
    %20 = vector.load %arg2[%c0_6, %c0_7] : memref<32x96xf32, #tpu.memory_space<vmem>>, vector<32x32xf32>
    %cst_8 = arith.constant dense<0.000000e+00> : vector<32x128xf32>
    %21 = tpu.matmul %20, %19, %cst_8 {dimension_numbers = #tpu.dot_dimension_numbers<[1], [0], [0], [1], [0, 0, 1, 1], [], []>} : vector<32x32xf32>, vector<32x128xf32>, vector<32x128xf32> -> vector<32x128xf32>
    %22 = vector.broadcast %17 : vector<1x128xf32> to vector<32x128xf32>
    %23 = arith.mulf %21, %22 : vector<32x128xf32>
    %24 = vector.extract_strided_slice %0 {offsets = [0, 2], sizes = [32, 1], strides = [1, 1]} : vector<32x5xf32> to vector<32x1xf32>
    %25 = vector.broadcast %24 : vector<32x1xf32> to vector<32x128xf32>
    %26 = arith.addf %23, %25 : vector<32x128xf32>
    %27 = arith.addf %26, %8 : vector<32x128xf32>
    %28 = arith.mulf %27, %27 : vector<32x128xf32>
    %cst_9 = arith.constant dense<0.000000e+00> : vector<128xf32>
    %29 = vector.multi_reduction <add>, %28, %cst_9 [0] : vector<32x128xf32> to vector<128xf32>
    %30 = vector.shape_cast %29 : vector<128xf32> to vector<1x128xf32>
    %31 = math.sqrt %30 : vector<1x128xf32>
    %cst_10 = arith.constant 0.176776692 : f32
    %32 = vector.broadcast %cst_10 : f32 to vector<1x128xf32>
    %33 = arith.mulf %31, %32 : vector<1x128xf32>
    %cst_11 = arith.constant 9.99999993E-9 : f32
    %34 = vector.broadcast %cst_11 : f32 to vector<1x128xf32>
    %35 = arith.addf %33, %34 : vector<1x128xf32>
    %36 = tpu.reciprocal %35 : vector<1x128xf32> -> vector<1x128xf32>
    %cst_12 = arith.constant 0.000000e+00 : f32
    %37 = vector.broadcast %cst_12 : f32 to vector<32x128xf32>
    %38 = arith.maximumf %27, %37 : vector<32x128xf32>
    %c0_13 = arith.constant 0 : index
    %c32 = arith.constant 32 : index
    %39 = vector.load %arg2[%c0_13, %c32] : memref<32x96xf32, #tpu.memory_space<vmem>>, vector<32x32xf32>
    %cst_14 = arith.constant dense<0.000000e+00> : vector<32x128xf32>
    %40 = tpu.matmul %39, %38, %cst_14 {dimension_numbers = #tpu.dot_dimension_numbers<[1], [0], [0], [1], [0, 0, 1, 1], [], []>} : vector<32x32xf32>, vector<32x128xf32>, vector<32x128xf32> -> vector<32x128xf32>
    %41 = vector.broadcast %36 : vector<1x128xf32> to vector<32x128xf32>
    %42 = arith.mulf %40, %41 : vector<32x128xf32>
    %43 = vector.extract_strided_slice %0 {offsets = [0, 3], sizes = [32, 1], strides = [1, 1]} : vector<32x5xf32> to vector<32x1xf32>
    %44 = vector.broadcast %43 : vector<32x1xf32> to vector<32x128xf32>
    %45 = arith.addf %42, %44 : vector<32x128xf32>
    %46 = arith.addf %45, %27 : vector<32x128xf32>
    %47 = arith.mulf %46, %46 : vector<32x128xf32>
    %cst_15 = arith.constant dense<0.000000e+00> : vector<128xf32>
    %48 = vector.multi_reduction <add>, %47, %cst_15 [0] : vector<32x128xf32> to vector<128xf32>
    %49 = vector.shape_cast %48 : vector<128xf32> to vector<1x128xf32>
    %50 = math.sqrt %49 : vector<1x128xf32>
    %cst_16 = arith.constant 0.176776692 : f32
    %51 = vector.broadcast %cst_16 : f32 to vector<1x128xf32>
    %52 = arith.mulf %50, %51 : vector<1x128xf32>
    %cst_17 = arith.constant 9.99999993E-9 : f32
    %53 = vector.broadcast %cst_17 : f32 to vector<1x128xf32>
    %54 = arith.addf %52, %53 : vector<1x128xf32>
    %55 = tpu.reciprocal %54 : vector<1x128xf32> -> vector<1x128xf32>
    %cst_18 = arith.constant 0.000000e+00 : f32
    %56 = vector.broadcast %cst_18 : f32 to vector<32x128xf32>
    %57 = arith.maximumf %46, %56 : vector<32x128xf32>
    %c0_19 = arith.constant 0 : index
    %c64 = arith.constant 64 : index
    %58 = vector.load %arg2[%c0_19, %c64] : memref<32x96xf32, #tpu.memory_space<vmem>>, vector<32x32xf32>
    %cst_20 = arith.constant dense<0.000000e+00> : vector<32x128xf32>
    %59 = tpu.matmul %58, %57, %cst_20 {dimension_numbers = #tpu.dot_dimension_numbers<[1], [0], [0], [1], [0, 0, 1, 1], [], []>} : vector<32x32xf32>, vector<32x128xf32>, vector<32x128xf32> -> vector<32x128xf32>
    %60 = vector.broadcast %55 : vector<1x128xf32> to vector<32x128xf32>
    %61 = arith.mulf %59, %60 : vector<32x128xf32>
    %62 = vector.extract_strided_slice %0 {offsets = [0, 4], sizes = [32, 1], strides = [1, 1]} : vector<32x5xf32> to vector<32x1xf32>
    %63 = vector.broadcast %62 : vector<32x1xf32> to vector<32x128xf32>
    %64 = arith.addf %61, %63 : vector<32x128xf32>
    %65 = arith.addf %64, %46 : vector<32x128xf32>
    %66 = arith.mulf %65, %65 : vector<32x128xf32>
    %cst_21 = arith.constant dense<0.000000e+00> : vector<128xf32>
    %67 = vector.multi_reduction <add>, %66, %cst_21 [0] : vector<32x128xf32> to vector<128xf32>
    %68 = vector.shape_cast %67 : vector<128xf32> to vector<1x128xf32>
    %69 = math.sqrt %68 : vector<1x128xf32>
    %cst_22 = arith.constant 0.176776692 : f32
    %70 = vector.broadcast %cst_22 : f32 to vector<1x128xf32>
    %71 = arith.mulf %69, %70 : vector<1x128xf32>
    %cst_23 = arith.constant 9.99999993E-9 : f32
    %72 = vector.broadcast %cst_23 : f32 to vector<1x128xf32>
    %73 = arith.addf %71, %72 : vector<1x128xf32>
    %74 = tpu.reciprocal %73 : vector<1x128xf32> -> vector<1x128xf32>
    %cst_24 = arith.constant 0.000000e+00 : f32
    %75 = vector.broadcast %cst_24 : f32 to vector<32x128xf32>
    %76 = arith.maximumf %65, %75 : vector<32x128xf32>
    %c0_25 = arith.constant 0 : index
    %c0_26 = arith.constant 0 : index
    %77 = vector.load %arg3[%c0_25, %c0_26] : memref<16x33xf32, #tpu.memory_space<vmem>>, vector<16x32xf32>
    %c0_27 = arith.constant 0 : index
    %c32_28 = arith.constant 32 : index
    %78 = vector.load %arg3[%c0_27, %c32_28] : memref<16x33xf32, #tpu.memory_space<vmem>>, vector<16x1xf32>
    %cst_29 = arith.constant dense<0.000000e+00> : vector<16x128xf32>
    %79 = tpu.matmul %77, %76, %cst_29 {dimension_numbers = #tpu.dot_dimension_numbers<[1], [0], [0], [1], [0, 0, 1, 1], [], []>} : vector<16x32xf32>, vector<32x128xf32>, vector<16x128xf32> -> vector<16x128xf32>
    %80 = vector.broadcast %74 : vector<1x128xf32> to vector<16x128xf32>
    %81 = arith.mulf %79, %80 : vector<16x128xf32>
    %82 = vector.broadcast %78 : vector<16x1xf32> to vector<16x128xf32>
    %83 = arith.addf %81, %82 : vector<16x128xf32>
    %c0_30 = arith.constant 0 : index
    %c0_31 = arith.constant 0 : index
    %84 = vector.load %arg5[%c0_30, %c0_31] : memref<16x128xf32, #tpu.memory_space<vmem>>, vector<16x128xf32>
    tpu.vector_store %arg5[%c0_30, %c0_31], %83 {strides = array<i32>} : memref<16x128xf32, #tpu.memory_space<vmem>>, vector<16x128xf32>,
    return
  }
  func.func @transform_0(%arg0: i32) -> (i32, i32) {
    %c0_i32 = arith.constant 0 : i32
    %c0_i32_0 = arith.constant 0 : i32
    return %c0_i32, %arg0 : i32, i32
  }
  func.func @transform_1(%arg0: i32) -> (i32, i32) {
    %c0_i32 = arith.constant 0 : i32
    %c0_i32_0 = arith.constant 0 : i32
    %c0_i32_1 = arith.constant 0 : i32
    return %c0_i32, %c0_i32_0 : i32, i32
  }
  func.func @transform_2(%arg0: i32) -> (i32, i32) {
    %c0_i32 = arith.constant 0 : i32
    %c0_i32_0 = arith.constant 0 : i32
    %c0_i32_1 = arith.constant 0 : i32
    return %c0_i32, %c0_i32_0 : i32, i32
  }
  func.func @transform_3(%arg0: i32) -> (i32, i32) {
    %c0_i32 = arith.constant 0 : i32
    %c0_i32_0 = arith.constant 0 : i32
    %c0_i32_1 = arith.constant 0 : i32
    return %c0_i32, %c0_i32_0 : i32, i32
  }
  func.func @transform_4(%arg0: i32) -> (i32, i32) {
    %c0_i32 = arith.constant 0 : i32
    %c0_i32_0 = arith.constant 0 : i32
    return %c0_i32, %arg0 : i32, i32
  }
}

</mosaic_0001>

<bundles_post_ra>
// kernel: rpe_forward.1
= control target key start
LH: loop header
LB: loop body
LE: loop exit
PB: predicated region body
PF: predicated region fallthrough
CT: control target
= control target key end

     0   :  { %9 = vsyncpa [#allocation3], 0  ;;  %s621_s18 = smov [#allocation2]   ;;  %s622_s20 = smov 128   ;;  %s827_s0 = inlined_call_operand.vmem [shape: f32[1,128], index: 0, kind: input, shape index: {}]   ;;  %s828_s1 = inlined_call_operand.vmem [shape: f32[32,96], index: 1, kind: input, shape index: {}]   ;;  %s829_s2 = inlined_call_operand.hbm [shape: f32[16,33], index: 2, kind: input, shape index: {}]   ;;  %s830_s3 = inlined_call_operand.vmem [shape: f32[32,5], index: 3, kind: input, shape index: {}]   ;;  %s831_s4 = inlined_call_operand.vmem [shape: f32[16,128], index: 4, kind: output, shape index: {}]  }
   0x1   :  { %s18_s17 = sshll.u32 %s829_s2, 4  ;;  %s20_s19 = sshll.u32 %s621_s18, 4  ;;  %s19_s17 = int_to_ptr.hbm [resolvable:$true] %s18_s17  ;;  %s21_s19 = int_to_ptr.vmem [resolvable:$true] %s20_s19 }
   0x2   :  { %s623_s21 = smov 8  }
   0x3   :  { %26 = dma.hbm_to_vmem [thread:$0]  %s19_s17, 256, %s21_s19, [#allocation3], %s622_s20, %s622_s20, %s623_s21  }
   0x4   :  { %619 = dma.done.wait [#allocation3], 256  }
   0x5   :  { %620 = vsyncadd [#allocation3], 4294967040  ;;  %v624_v0 = vmov 1   ;;  %v625_v1 = vmov 0   ;;  %v663_v2 = vld [vmem:[%s830_s3 + $0x18] sm:$0xff]  ;;  %v670_v3 = vld [vmem:[%s830_s3 + $0x10] sm:$0xff] }
   0x6   :  { %561 = vset.pattern.permute.xlu1 %v624_v0  ;;  %560 = vset.pattern.permute.xlu0 %v625_v1  ;;  %v676_v4 = vld [vmem:[%s830_s3 + $0x8] sm:$0xff]  ;;  %v683_v5 = vld [vmem:[%s830_s3] sm:$0xff]  ;;  %v626_v13 = vmov 2   ;;  %s627_s5 = smov 96   ;;  %v716_v29 = vld [vmem:[%s828_s1 + $0x10] sm:$0xff]  ;;  %vm134_vm0 = vcmask 261120  }
   0x7   :  { %563 = vset.pattern.permute.xlu2 %v624_v0  ;;  %78 = vperm.xlu1 %561, %v663_v2   ;;  %v578_v6 = vld [vmem:[%s827_s0] ss:$0 sm:$0xff]  ;;  %v722_v30 = vld [vmem:[%s828_s1 + $0x8] sm:$0xff]  ;;  %v730_v31 = vld [vmem:[%s828_s1 + $0x18] sm:$0xff]  ;;  %v628_v63 = vmov 3  }
   0x8   :  { %55 = vperm.xlu0 %560, %v663_v2   ;;  %74 = vperm.xlu2 %563, %v670_v3   ;;  %v703_v20 = vld [vmem:[%s828_s1] sm:$0xff]  ;;  %s629_s1 = smov 64  }
   0xf   :  { %562 = vset.pattern.permute.xlu1 %v625_v1 }
  0x10   :  { %50 = vperm.xlu0 %560, %v670_v3   ;;  %45 = vperm.xlu1 %562, %v676_v4  }
  0x11   :  { %564 = vset.pattern.permute.xlu2 %v625_v1 }
  0x12   :  { %40 = vperm.xlu2 %564, %v683_v5  }
  0x18   :  { %565 = vset.pattern.permute.xlu0 %v624_v0  ;;  %566 = vset.pattern.permute.xlu1 %v624_v0 }
  0x19   :  { %70 = vperm.xlu0 %565, %v676_v4   ;;  %66 = vperm.xlu1 %566, %v683_v5  }
  0x1a   :  { %567 = vset.pattern.permute.xlu2 %v626_v13 }
  0x1b   :  { %193 = vperm.xlu2 %567, %v663_v2  }
  0x21   :  { %569 = vset.pattern.permute.xlu0 %v626_v13  ;;  %568 = vset.pattern.permute.xlu1 %v626_v13 }
  0x22   :  { %181 = vperm.xlu0 %569, %v683_v5   ;;  %189 = vperm.xlu1 %568, %v670_v3  }
  0x23   :  { %185 = vperm.xlu2 %567, %v676_v4  }
  0x2a   :  { %249 = vrot.lane.b32.xlu1 %v703_v20, %s627_s5  ;;  %570 = vset.pattern.permute.xlu0 %v628_v63 }
  0x2b   :  { %251 = vrot.lane.b32.xlu2 %v722_v30, %s627_s5  ;;  %571 = vset.pattern.permute.xlu1 %v628_v63 }
  0x2c   :  { %311 = vperm.xlu0 %570, %v663_v2   ;;  %572 = vset.pattern.permute.xlu2 %v628_v63 }
  0x32   :  { %253 = vrot.lane.b32.xlu1 %v716_v29, %s627_s5 }
  0x33   :  { %255 = vrot.lane.b32.xlu2 %v730_v31, %s627_s5 }
  0x34   :  { %369 = vrot.lane.b32.xlu0 %v722_v30, %s629_s1 }
  0x3a   :  { %307 = vperm.xlu1 %571, %v670_v3  }
  0x3b   :  { %303 = vperm.xlu2 %572, %v676_v4  }
  0x42   :  { %299 = vperm.xlu1 %571, %v683_v5  }
  0x43   :  { %367 = vrot.lane.b32.xlu2 %v703_v20, %s629_s1 }
  0x4a   :  { %371 = vrot.lane.b32.xlu1 %v716_v29, %s629_s1 }
  0x4b   :  { %373 = vrot.lane.b32.xlu2 %v730_v31, %s629_s1 }
  0x62   :  { %v75_v10 = vpop.permute.xlu2 %74 }
  0x6c   :  { %v41_v18 = vpop.permute.xlu2 %40 }
  0x6d   :  { %v61_v21 = vmul.f32 %v578_v6, %v41_v18 }
  0x79   :  { %v79_v8 = vpop.permute.xlu1 %78 }
  0x7a   :  { %v56_v7 = vpop.permute.xlu0 %55 }
  0x7b   :  { %v64_v9 = vmul.f32 %v578_v6, %v56_v7 }
  0x7d   :  { %v691_v11 = vadd.f32 %v79_v8, %v64_v9 }
  0x7f   :  { %v129_v12 = vmax.f32 %v691_v11, 0.0  ;;  %v88_v37 = vmul.f32 %v691_v11, %v691_v11 }
  0x81   :  { %159 = vmatpush.msra.mxu0 %v129_v12 }
  0x82   :  { %v51_v14 = vpop.permute.xlu0 %50  ;;  %v46_v16 = vpop.permute.xlu1 %45 }
  0x83   :  { %v63_v15 = vmul.f32 %v578_v6, %v51_v14  ;;  %v62_v22 = vmul.f32 %v578_v6, %v46_v16  ;;  %v194_v6 = vpop.permute.xlu2 %193 }
  0x85   :  { %v697_v17 = vadd.f32 %v75_v10, %v63_v15 }
  0x87   :  { %v128_v19 = vmax.f32 %v697_v17, 0.0  ;;  %v87_v35 = vmul.f32 %v697_v17, %v697_v17 }
  0x89   :  { %160 = vmatpush.msra.mxu0 %v128_v19 }
  0x8b   :  { %v71_v23 = vpop.permute.xlu0 %70  ;;  %v67_v25 = vpop.permute.xlu1 %66 }
  0x8c   :  { %v707_v24 = vadd.f32 %v71_v23, %v62_v22  ;;  %v709_v26 = vadd.f32 %v67_v25, %v61_v21  ;;  %v186_v16 = vpop.permute.xlu2 %185 }
  0x8e   :  { %v127_v27 = vmax.f32 %v707_v24, 0.0  ;;  %v126_v28 = vmax.f32 %v709_v26, 0.0  ;;  %v86_v32 = vmul.f32 %v707_v24, %v707_v24  ;;  %v85_v33 = vmul.f32 %v709_v26, %v709_v26 }
  0x90   :  { %161 = vmatpush.msra.mxu0 %v127_v27  ;;  %v89_v34 = vadd.f32 %v86_v32, %v85_v33 }
  0x92   :  { %162 = vmatpush.msra.mxu0 %v126_v28  ;;  %v90_v36 = vadd.f32 %v89_v34, %v87_v35 }
  0x93   :  { %535 = vmatmul.msk.f32.vlgmr.msra.gmra.mxu0 %vm134_vm0, %v703_v20 }
  0x94   :  { %v91_v38 = vadd.f32 %v90_v36, %v88_v37  ;;  %v190_v14 = vpop.permute.xlu1 %189  ;;  %v182_v23 = vpop.permute.xlu0 %181 }
  0x96   :  { %v92_v39 = vrot.slane %v91_v38, 4 }
  0x98   :  { %v93_v40 = vadd.f32 %v92_v39, %v91_v38 }
  0x9a   :  { %v94_v41 = vrot.slane %v93_v40, 2 }
  0x9b   :  { %536 = vmatmul.msk.f32.gmra.mxu0 %vm134_vm0, %v722_v30 }
  0x9c   :  { %v95_v42 = vadd.f32 %v94_v41, %v93_v40 }
  0x9e   :  { %v96_v43 = vrot.slane %v95_v42, 1 }
  0xa0   :  { %v97_v44 = vadd.f32 %v96_v43, %v95_v42 }
  0xa2   :  { %579 = vrsqrt.f32 %v97_v44  ;;  %vm105_vm1 = vcmp.eq.f32.partialorder %v97_v44, inf  ;;  %v108_v53 = vand.u32 2147483648, %v97_v44  ;;  %vm107_vm2 = vcmp.eq.f32.partialorder %v97_v44, 0.0 }
  0xa3   :  { %537 = vmatmul.msk.f32.gmra.mxu0 %vm134_vm0, %v716_v29 }
  0xa8   :  { %v580_v45 = vpop.eup %579 }
  0xa9   :  { %v99_v46 = vmul.f32 %v580_v45, %v97_v44 }
  0xab   :  { %538 = vmatmul.msk.f32.gmra.mxu0 %vm134_vm0, %v730_v31  ;;  %v100_v47 = vmul.f32 %v580_v45, %v99_v46 }
  0xad   :  { %v101_v48 = vmul.f32 0.5, %v100_v47 }
  0xaf   :  { %v102_v49 = vsub.f32 1.5, %v101_v48 }
  0xb1   :  { %v103_v50 = vmul.f32 %v580_v45, %v102_v49 }
  0xb3   :  { %v104_v51 = vmul.f32 %v103_v50, %v97_v44 }
  0xb5   :  { %v106_v52 = vsel %vm105_vm1, %v97_v44, %v104_v51 }
  0xb6   :  { %v109_v54 = vsel %vm107_vm2, %v108_v53, %v106_v52 }
  0xb7   :  { %v110_v55 = vmul.f32 0.17677669, %v109_v54 }
  0xb9   :  { %v111_v56 = vadd.f32 1e-08, %v110_v55 }
  0xbb   :  { %581 = vrcp.f32 %v111_v56  ;;  %v123_v1 = vand.u32 2147483648, %v111_v56  ;;  %vm117_vm4 = vweird.f32 %v111_v56  ;;  %v121_v7 = vand.u32 2147483647, %v111_v56 }
  0xbd   :  { %v124_v10 = vor.u32 1.1754944e-38, %v123_v1  ;;  %vm122_vm6 = vcmp.eq.f32.partialorder %v121_v7, 8.507059e+37 }
  0xc1   :  { %v582_v57 = vpop.eup %581 }
  0xc2   :  { %v113_v59 = vmul.f32 %v582_v57, %v111_v56  ;;  %vm118_vm3 = vweird.f32 %v582_v57 }
  0xc3   :  { %vm119_vm5 = vmor %vm117_vm4, %vm118_vm3 }
  0xc4   :  { %v114_v60 = vsub.f32 1.0, %v113_v59 }
  0xc6   :  { %v115_v62 = vmul.f32 %v582_v57, %v114_v60 }
  0xc8   :  { %v116_v0 = vadd.f32 %v582_v57, %v115_v62 }
  0xca   :  { %v120_v9 = vsel %vm119_vm5, %v582_v57, %v116_v0 }
  0xcb   :  { %v125_v12 = vsel %vm122_vm6, %v124_v10, %v120_v9 }
 0x110   :  { %v164_v58 = vpop.f32.mrf.mxu0 }
 0x111   :  { %v176_v19 = vmul.f32 %v164_v58, %v125_v12 }
 0x113   :  { %v196_v28 = vadd.f32 %v182_v23, %v176_v19  ;;  %v312_v23 = vpop.permute.xlu0 %311 }
 0x115   :  { %v766_v34 = vadd.f32 %v196_v28, %v709_v26 }
 0x117   :  { %v245_v29 = vmax.f32 %v766_v34, 0.0  ;;  %v204_v37 = vmul.f32 %v766_v34, %v766_v34 }
 0x118   :  { %v167_v61 = vpop.f32.mrf.mxu0 }
 0x119   :  { %v177_v15 = vmul.f32 %v167_v61, %v125_v12 }
 0x11b   :  { %v197_v25 = vadd.f32 %v186_v16, %v177_v15 }
 0x11d   :  { %v761_v30 = vadd.f32 %v197_v25, %v707_v24  ;;  %v252_v24 = vpop.permute.xlu2 %251 }
 0x11f   :  { %v205_v36 = vmul.f32 %v761_v30, %v761_v30 }
 0x120   :  { %v170_v8 = vpop.f32.mrf.mxu0 }
 0x121   :  { %v178_v13 = vmul.f32 %v170_v8, %v125_v12  ;;  %v208_v39 = vadd.f32 %v205_v36, %v204_v37 }
 0x123   :  { %v198_v21 = vadd.f32 %v190_v14, %v178_v13  ;;  %v630_v14 = vmov 4  }
 0x124   :  { %574 = vset.pattern.permute.xlu1 %v630_v14  ;;  %573 = vset.pattern.permute.xlu0 %v630_v14 }
 0x125   :  { %v754_v32 = vadd.f32 %v198_v21, %v697_v17  ;;  %v246_v17 = vmax.f32 %v761_v30, 0.0  ;;  %v256_v26 = vpop.permute.xlu2 %255  ;;  %425 = vperm.xlu1 %574, %v670_v3   ;;  %429 = vperm.xlu0 %573, %v663_v2  }
 0x126   :  { %575 = vset.pattern.permute.xlu2 %v630_v14 }
 0x127   :  { %v247_v35 = vmax.f32 %v754_v32, 0.0  ;;  %v206_v38 = vmul.f32 %v754_v32, %v754_v32  ;;  %421 = vperm.xlu2 %575, %v676_v4  }
 0x128   :  { %v173_v18 = vpop.f32.mrf.mxu0 }
 0x129   :  { %v179_v22 = vmul.f32 %v173_v18, %v125_v12  ;;  %v209_v41 = vadd.f32 %v208_v39, %v206_v38 }
 0x12b   :  { %v199_v27 = vadd.f32 %v194_v6, %v179_v22 }
 0x12d   :  { %v757_v33 = vadd.f32 %v199_v27, %v691_v11  ;;  %v250_v11 = vpop.permute.xlu1 %249  ;;  %v304_v21 = vpop.permute.xlu2 %303  ;;  %417 = vperm.xlu1 %574, %v683_v5  }
 0x12f   :  { %v248_v20 = vmax.f32 %v757_v33, 0.0  ;;  %v207_v40 = vmul.f32 %v757_v33, %v757_v33 }
 0x131   :  { %277 = vmatpush.msra.mxu1 %v248_v20  ;;  %v210_v42 = vadd.f32 %v209_v41, %v207_v40 }
 0x133   :  { %278 = vmatpush.msra.mxu1 %v247_v35  ;;  %v211_v43 = vrot.slane %v210_v42, 4 }
 0x135   :  { %279 = vmatpush.msra.mxu1 %v246_v17  ;;  %v254_v31 = vpop.permute.xlu1 %253  ;;  %v212_v44 = vadd.f32 %v211_v43, %v210_v42 }
 0x137   :  { %280 = vmatpush.msra.mxu1 %v245_v29  ;;  %v213_v45 = vrot.slane %v212_v44, 2 }
 0x138   :  { %539 = vmatmul.msk.f32.vlgmr.msra.gmra.mxu1 %vm134_vm0, %v250_v11 }
 0x139   :  { %v214_v46 = vadd.f32 %v213_v45, %v212_v44 }
 0x13b   :  { %v215_v47 = vrot.slane %v214_v46, 1 }
 0x13d   :  { %v216_v48 = vadd.f32 %v215_v47, %v214_v46  ;;  %v308_v10 = vpop.permute.xlu1 %307 }
 0x13f   :  { %583 = vrsqrt.f32 %v216_v48  ;;  %vm224_vm7 = vcmp.eq.f32.partialorder %v216_v48, inf  ;;  %v227_v57 = vand.u32 2147483648, %v216_v48  ;;  %vm226_vm8 = vcmp.eq.f32.partialorder %v216_v48, 0.0 }
 0x140   :  { %540 = vmatmul.msk.f32.gmra.mxu1 %vm134_vm0, %v252_v24 }
 0x145   :  { %v584_v49 = vpop.eup %583  ;;  %v300_v20 = vpop.permute.xlu1 %299 }
 0x146   :  { %v218_v50 = vmul.f32 %v584_v49, %v216_v48 }
 0x148   :  { %541 = vmatmul.msk.f32.gmra.mxu1 %vm134_vm0, %v254_v31  ;;  %v219_v51 = vmul.f32 %v584_v49, %v218_v50 }
 0x14a   :  { %v220_v52 = vmul.f32 0.5, %v219_v51 }
 0x14c   :  { %v221_v53 = vsub.f32 1.5, %v220_v52 }
 0x14e   :  { %v222_v54 = vmul.f32 %v584_v49, %v221_v53 }
 0x150   :  { %542 = vmatmul.msk.f32.gmra.mxu1 %vm134_vm0, %v256_v26  ;;  %v223_v55 = vmul.f32 %v222_v54, %v216_v48  ;;  %v368_v26 = vpop.permute.xlu2 %367 }
 0x152   :  { %v225_v56 = vsel %vm224_vm7, %v216_v48, %v223_v55 }
 0x153   :  { %v228_v58 = vsel %vm226_vm8, %v227_v57, %v225_v56 }
 0x154   :  { %v229_v59 = vmul.f32 0.17677669, %v228_v58 }
 0x156   :  { %v230_v60 = vadd.f32 1e-08, %v229_v59 }
 0x158   :  { %585 = vrcp.f32 %v230_v60  ;;  %v242_v8 = vand.u32 2147483648, %v230_v60  ;;  %vm236_vm10 = vweird.f32 %v230_v60  ;;  %v240_v9 = vand.u32 2147483647, %v230_v60 }
 0x15a   :  { %v243_v15 = vor.u32 1.1754944e-38, %v242_v8  ;;  %vm241_vm12 = vcmp.eq.f32.partialorder %v240_v9, 8.507059e+37 }
 0x15e   :  { %v586_v61 = vpop.eup %585 }
 0x15f   :  { %v232_v63 = vmul.f32 %v586_v61, %v230_v60  ;;  %vm237_vm9 = vweird.f32 %v586_v61 }
 0x160   :  { %vm238_vm11 = vmor %vm236_vm10, %vm237_vm9 }
 0x161   :  { %v233_v0 = vsub.f32 1.0, %v232_v63 }
 0x163   :  { %v234_v6 = vmul.f32 %v586_v61, %v233_v0 }
 0x165   :  { %v235_v7 = vadd.f32 %v586_v61, %v234_v6 }
 0x167   :  { %v239_v13 = vsel %vm238_vm11, %v586_v61, %v235_v7 }
 0x168   :  { %v244_v16 = vsel %vm241_vm12, %v243_v15, %v239_v13 }
 0x1b5   :  { %v282_v62 = vpop.f32.mrf.mxu1 }
 0x1b6   :  { %v294_v25 = vmul.f32 %v282_v62, %v244_v16 }
 0x1b8   :  { %v314_v17 = vadd.f32 %v300_v20, %v294_v25 }
 0x1ba   :  { %v798_v24 = vadd.f32 %v314_v17, %v766_v34  ;;  %v374_v34 = vpop.permute.xlu2 %373  ;;  %v485_v17 = vld [vmem:[#allocation2] sm:$0xff] }
 0x1bc   :  { %v322_v37 = vmul.f32 %v798_v24, %v798_v24 }
 0x1bd   :  { %v285_v1 = vpop.f32.mrf.mxu1 }
 0x1be   :  { %v295_v19 = vmul.f32 %v285_v1, %v244_v16 }
 0x1c0   :  { %v315_v35 = vadd.f32 %v304_v21, %v295_v19 }
 0x1c2   :  { %v794_v4 = vadd.f32 %v315_v35, %v761_v30  ;;  %v372_v30 = vpop.permute.xlu1 %371  ;;  %v422_v19 = vpop.permute.xlu2 %421 }
 0x1c4   :  { %v364_v31 = vmax.f32 %v794_v4, 0.0  ;;  %v323_v36 = vmul.f32 %v794_v4, %v794_v4 }
 0x1c5   :  { %v288_v12 = vpop.f32.mrf.mxu1 }
 0x1c6   :  { %v296_v18 = vmul.f32 %v288_v12, %v244_v16  ;;  %v326_v39 = vadd.f32 %v323_v36, %v322_v37 }
 0x1c8   :  { %v316_v27 = vadd.f32 %v308_v10, %v296_v18 }
 0x1ca   :  { %v788_v2 = vadd.f32 %v316_v27, %v754_v32  ;;  %v363_v32 = vmax.f32 %v798_v24, 0.0  ;;  %v426_v1 = vpop.permute.xlu1 %425 }
 0x1cc   :  { %v365_v5 = vmax.f32 %v788_v2, 0.0  ;;  %v324_v38 = vmul.f32 %v788_v2, %v788_v2 }
 0x1cd   :  { %v291_v22 = vpop.f32.mrf.mxu1 }
 0x1ce   :  { %v297_v28 = vmul.f32 %v291_v22, %v244_v16  ;;  %v327_v41 = vadd.f32 %v326_v39, %v324_v38 }
 0x1d0   :  { %v317_v3 = vadd.f32 %v312_v23, %v297_v28 }
 0x1d2   :  { %v791_v11 = vadd.f32 %v317_v3, %v757_v33  ;;  %v370_v33 = vpop.permute.xlu0 %369  ;;  %v418_v15 = vpop.permute.xlu1 %417 }
 0x1d4   :  { %v366_v29 = vmax.f32 %v791_v11, 0.0  ;;  %v325_v40 = vmul.f32 %v791_v11, %v791_v11 }
 0x1d6   :  { %395 = vmatpush.msra.mxu2 %v366_v29  ;;  %v328_v42 = vadd.f32 %v327_v41, %v325_v40  ;;  %v486_v29 = vld [vmem:[#allocation2 + $0x8] sm:$0xff] }
 0x1d8   :  { %396 = vmatpush.msra.mxu2 %v365_v5  ;;  %v329_v43 = vrot.slane %v328_v42, 4  ;;  %v631_v5 = vmov 32  }
 0x1d9   :  { %577 = vset.pattern.permute.xlu0 %v631_v5  ;;  %576 = vset.pattern.permute.xlu2 %v631_v5 }
 0x1da   :  { %397 = vmatpush.msra.mxu2 %v364_v31  ;;  %v330_v44 = vadd.f32 %v329_v43, %v328_v42  ;;  %523 = vperm.xlu0 %577, %v486_v29  }
 0x1db   :  { %519 = vperm.xlu2 %576, %v485_v17  }
 0x1dc   :  { %398 = vmatpush.msra.mxu2 %v363_v32  ;;  %v331_v45 = vrot.slane %v330_v44, 2 }
 0x1dd   :  { %543 = vmatmul.msk.f32.vlgmr.msra.gmra.mxu2 %vm134_vm0, %v368_v26 }
 0x1de   :  { %v332_v46 = vadd.f32 %v331_v45, %v330_v44 }
 0x1e0   :  { %v333_v47 = vrot.slane %v332_v46, 1 }
 0x1e2   :  { %v334_v48 = vadd.f32 %v333_v47, %v332_v46 }
 0x1e4   :  { %587 = vrsqrt.f32 %v334_v48  ;;  %vm342_vm13 = vcmp.eq.f32.partialorder %v334_v48, inf  ;;  %v345_v57 = vand.u32 2147483648, %v334_v48  ;;  %vm344_vm14 = vcmp.eq.f32.partialorder %v334_v48, 0.0 }
 0x1e5   :  { %544 = vmatmul.msk.f32.gmra.mxu2 %vm134_vm0, %v370_v33  ;;  %v430_v33 = vpop.permute.xlu0 %429 }
 0x1ea   :  { %v588_v49 = vpop.eup %587 }
 0x1eb   :  { %v336_v50 = vmul.f32 %v588_v49, %v334_v48 }
 0x1ed   :  { %545 = vmatmul.msk.f32.gmra.mxu2 %vm134_vm0, %v372_v30  ;;  %v337_v51 = vmul.f32 %v588_v49, %v336_v50 }
 0x1ef   :  { %v338_v52 = vmul.f32 0.5, %v337_v51 }
 0x1f1   :  { %v339_v53 = vsub.f32 1.5, %v338_v52 }
 0x1f3   :  { %v340_v54 = vmul.f32 %v588_v49, %v339_v53 }
 0x1f5   :  { %546 = vmatmul.msk.f32.gmra.mxu2 %vm134_vm0, %v374_v34  ;;  %v341_v55 = vmul.f32 %v340_v54, %v334_v48 }
 0x1f7   :  { %v343_v56 = vsel %vm342_vm13, %v334_v48, %v341_v55 }
 0x1f8   :  { %v346_v58 = vsel %vm344_vm14, %v345_v57, %v343_v56 }
 0x1f9   :  { %v347_v59 = vmul.f32 0.17677669, %v346_v58 }
 0x1fb   :  { %v348_v60 = vadd.f32 1e-08, %v347_v59 }
 0x1fd   :  { %589 = vrcp.f32 %v348_v60  ;;  %v360_v7 = vand.u32 2147483648, %v348_v60  ;;  %vm354_vm1 = vweird.f32 %v348_v60  ;;  %v358_v8 = vand.u32 2147483647, %v348_v60 }
 0x1ff   :  { %v361_v10 = vor.u32 1.1754944e-38, %v360_v7  ;;  %vm359_vm3 = vcmp.eq.f32.partialorder %v358_v8, 8.507059e+37 }
 0x203   :  { %v590_v61 = vpop.eup %589 }
 0x204   :  { %v350_v62 = vmul.f32 %v590_v61, %v348_v60  ;;  %vm355_vm15 = vweird.f32 %v590_v61 }
 0x205   :  { %vm356_vm2 = vmor %vm354_vm1, %vm355_vm15 }
 0x206   :  { %v351_v63 = vsub.f32 1.0, %v350_v62 }
 0x208   :  { %v352_v0 = vmul.f32 %v590_v61, %v351_v63 }
 0x20a   :  { %v353_v6 = vadd.f32 %v590_v61, %v352_v0 }
 0x20c   :  { %v357_v9 = vsel %vm356_vm2, %v590_v61, %v353_v6 }
 0x20d   :  { %v362_v13 = vsel %vm359_vm3, %v361_v10, %v357_v9 }
 0x235   :  { %v520_v10 = vpop.permute.xlu2 %519 }
 0x260   :  { %v400_v12 = vpop.f32.mrf.mxu2 }
 0x261   :  { %v412_v14 = vmul.f32 %v400_v12, %v362_v13 }
 0x263   :  { %v432_v16 = vadd.f32 %v418_v15, %v412_v14  ;;  %v524_v15 = vpop.permute.xlu0 %523 }
 0x265   :  { %v436_v22 = vadd.f32 %v432_v16, %v798_v24 }
 0x267   :  { %v440_v27 = vmul.f32 %v436_v22, %v436_v22  ;;  %v481_v42 = vmax.f32 %v436_v22, 0.0 }
 0x268   :  { %v403_v18 = vpop.f32.mrf.mxu2 }
 0x269   :  { %v413_v21 = vmul.f32 %v403_v18, %v362_v13 }
 0x26b   :  { %v433_v23 = vadd.f32 %v422_v19, %v413_v21 }
 0x26d   :  { %v437_v25 = vadd.f32 %v433_v23, %v794_v4 }
 0x26f   :  { %v441_v28 = vmul.f32 %v437_v25, %v437_v25  ;;  %v482_v41 = vmax.f32 %v437_v25, 0.0 }
 0x270   :  { %v406_v20 = vpop.f32.mrf.mxu2 }
 0x271   :  { %v444_v35 = vadd.f32 %v441_v28, %v440_v27  ;;  %v414_v3 = vmul.f32 %v406_v20, %v362_v13 }
 0x273   :  { %v434_v31 = vadd.f32 %v426_v1, %v414_v3 }
 0x275   :  { %v438_v32 = vadd.f32 %v434_v31, %v788_v2 }
 0x277   :  { %v442_v26 = vmul.f32 %v438_v32, %v438_v32  ;;  %v483_v40 = vmax.f32 %v438_v32, 0.0 }
 0x278   :  { %v409_v24 = vpop.f32.mrf.mxu2 }
 0x279   :  { %v415_v30 = vmul.f32 %v409_v24, %v362_v13  ;;  %v445_v4 = vadd.f32 %v444_v35, %v442_v26 }
 0x27b   :  { %v435_v34 = vadd.f32 %v430_v33, %v415_v30 }
 0x27d   :  { %v439_v36 = vadd.f32 %v435_v34, %v791_v11 }
 0x27f   :  { %v443_v37 = vmul.f32 %v439_v36, %v439_v36  ;;  %v484_v38 = vmax.f32 %v439_v36, 0.0 }
 0x281   :  { %505 = vmatpush.msra.mxu3 %v484_v38  ;;  %v446_v39 = vadd.f32 %v445_v4, %v443_v37 }
 0x283   :  { %506 = vmatpush.msra.mxu3 %v483_v40  ;;  %v447_v2 = vrot.slane %v446_v39, 4 }
 0x285   :  { %507 = vmatpush.msra.mxu3 %v482_v41  ;;  %v448_v43 = vadd.f32 %v447_v2, %v446_v39 }
 0x287   :  { %508 = vmatpush.msra.mxu3 %v481_v42  ;;  %v449_v44 = vrot.slane %v448_v43, 2 }
 0x288   :  { %547 = vmatmul.msk.f32.vlgmr.msra.gmra.mxu3 %vm134_vm0, %v485_v17 }
 0x289   :  { %v450_v45 = vadd.f32 %v449_v44, %v448_v43 }
 0x28b   :  { %v451_v46 = vrot.slane %v450_v45, 1 }
 0x28d   :  { %v452_v11 = vadd.f32 %v451_v46, %v450_v45 }
 0x28f   :  { %591 = vrsqrt.f32 %v452_v11  ;;  %vm460_vm4 = vcmp.eq.f32.partialorder %v452_v11, inf  ;;  %v463_v55 = vand.u32 2147483648, %v452_v11  ;;  %vm462_vm5 = vcmp.eq.f32.partialorder %v452_v11, 0.0 }
 0x290   :  { %548 = vmatmul.msk.f32.gmra.mxu3 %vm134_vm0, %v486_v29 }
 0x295   :  { %v592_v47 = vpop.eup %591 }
 0x296   :  { %v454_v48 = vmul.f32 %v592_v47, %v452_v11 }
 0x298   :  { %v455_v49 = vmul.f32 %v592_v47, %v454_v48 }
 0x29a   :  { %v456_v50 = vmul.f32 0.5, %v455_v49 }
 0x29c   :  { %v457_v51 = vsub.f32 1.5, %v456_v50 }
 0x29e   :  { %v458_v52 = vmul.f32 %v592_v47, %v457_v51 }
 0x2a0   :  { %v459_v53 = vmul.f32 %v458_v52, %v452_v11 }
 0x2a2   :  { %v461_v54 = vsel %vm460_vm4, %v452_v11, %v459_v53 }
 0x2a3   :  { %v464_v56 = vsel %vm462_vm5, %v463_v55, %v461_v54 }
 0x2a4   :  { %v465_v57 = vmul.f32 0.17677669, %v464_v56 }
 0x2a6   :  { %v466_v58 = vadd.f32 1e-08, %v465_v57 }
 0x2a8   :  { %593 = vrcp.f32 %v466_v58  ;;  %v478_v0 = vand.u32 2147483648, %v466_v58  ;;  %vm472_vm6 = vweird.f32 %v466_v58  ;;  %v476_v1 = vand.u32 2147483647, %v466_v58 }
 0x2aa   :  { %v479_v7 = vor.u32 1.1754944e-38, %v478_v0  ;;  %vm477_vm8 = vcmp.eq.f32.partialorder %v476_v1, 8.507059e+37 }
 0x2ae   :  { %v594_v59 = vpop.eup %593 }
 0x2af   :  { %v468_v60 = vmul.f32 %v594_v59, %v466_v58  ;;  %vm473_vm0 = vweird.f32 %v594_v59 }
 0x2b0   :  { %vm474_vm7 = vmor %vm472_vm6, %vm473_vm0 }
 0x2b1   :  { %v469_v61 = vsub.f32 1.0, %v468_v60 }
 0x2b3   :  { %v470_v62 = vmul.f32 %v594_v59, %v469_v61 }
 0x2b5   :  { %v471_v63 = vadd.f32 %v594_v59, %v470_v62 }
 0x2b7   :  { %v475_v6 = vsel %vm474_vm7, %v594_v59, %v471_v63 }
 0x2b8   :  { %v480_v8 = vsel %vm477_vm8, %v479_v7, %v475_v6 }
 0x30b   :  { %v510_v9 = vpop.f32.mrf.mxu3 }
 0x30c   :  { %v516_v12 = vmul.f32 %v510_v9, %v480_v8 }
 0x30e   :  { %v526_v13 = vadd.f32 %v520_v10, %v516_v12 }
 0x310   :  { %528 = vst [vmem:[%s831_s4] sm:$0xff] %v526_v13 }
 0x313   :  { %v513_v14 = vpop.f32.mrf.mxu3 }
 0x314   :  { %v517_v16 = vmul.f32 %v513_v14, %v480_v8 }
 0x316   :  { %v527_v18 = vadd.f32 %v524_v15, %v517_v16 }
 0x318   :  { %529 = vst [vmem:[%s831_s4 + $0x8] sm:$0xff] %v527_v18 }
 0x319   :  { %534 = vsyncpa [#allocation3], 1 }

</bundles_post_ra>
